<compile_context>
chip_gen: v7x
topology: tpu7x:2x2x1
jax: 0.10.0
libtpu: 0.0.40
codegen_flags: <defaults>
</compile_context>

<pallas_src>
import functools
import math

import jax
import jax.numpy as jnp
from jax.experimental import pallas as pl
from jax.experimental.pallas import tpu as pltpu

LANES = 128

# Giles (2012) single-precision erfinv approximation: only mul/add/log/sqrt/where.
_ERFINV_P_SMALL = (2.81022636e-08, 3.43273939e-07, -3.5233877e-06, -4.39150654e-06,
                   0.00021858087, -0.00125372503, -0.00417768164, 0.246640727,
                   1.50140941)
_ERFINV_P_BIG = (-0.000200214257, 0.000100950558, 0.00134934322, -0.00367342844,
                 0.00573950773, -0.0076224613, 0.00943887047, 1.00167406,
                 2.83297682)


def _erfinv_f32(x):
    w = -jnp.log((1.0 - x) * (1.0 + x))
    ws = w - 2.5
    ps = jnp.float32(_ERFINV_P_SMALL[0])
    for c in _ERFINV_P_SMALL[1:]:
        ps = jnp.float32(c) + ps * ws
    wb = jnp.sqrt(w) - 3.0
    pb = jnp.float32(_ERFINV_P_BIG[0])
    for c in _ERFINV_P_BIG[1:]:
        pb = jnp.float32(c) + pb * wb
    return jnp.where(w < 5.0, ps, pb) * x


def _normal_from_bits(bits):
    """Raw PRNG bits -> f32 standard normal (inverse-CDF, 23-bit uniform)."""
    if jnp.issubdtype(bits.dtype, jnp.unsignedinteger):
        bits = pltpu.bitcast(bits, jnp.int32)
    m = jnp.bitwise_and(bits, jnp.int32((1 << 23) - 1))
    # u in (0, 1), strictly away from the endpoints -> no log(0) / inf.
    u = (m.astype(jnp.float32) + 0.5) * jnp.float32(1.0 / (1 << 23))
    return jnp.float32(math.sqrt(2.0)) * _erfinv_f32(2.0 * u - 1.0)


def _apply_noise(x_ref, o_ref, z, sigma):
    scale = 1.0 + jnp.float32(sigma) * z          # f32
    x = x_ref[...]
    if jnp.dtype(x_ref.dtype).itemsize < 4:
        # bf16 / fp8 inputs: keep x in its native dtype on the VPU (v6e/v7x).
        o_ref[...] = x * scale.astype(o_ref.dtype)
    else:
        o_ref[...] = (x.astype(jnp.float32) * scale).astype(o_ref.dtype)


def _gaussian_noise_hw_kernel(seed_ref, x_ref, o_ref, *, sigma):
    # Per-tile seed -> independent noise per grid step, deterministic for a
    # given seed regardless of which TensorCore runs which tile.
    pltpu.prng_seed(seed_ref[0] + pl.program_id(0))
    bits = pltpu.prng_random_bits(x_ref.shape)
    _apply_noise(x_ref, o_ref, _normal_from_bits(bits), sigma)


def _gaussian_noise_precomputed_kernel(x_ref, z_ref, o_ref, *, sigma):
    # Portable fallback: noise was drawn outside the kernel (non-TPU backends).
    _apply_noise(x_ref, o_ref, z_ref[...].astype(jnp.float32), sigma)


def _round_up(a, b):
    return -(-a // b) * b


def gaussian_noise_pallas(x, seed, *, sigma=0.1, is_relative_detach=True,
                          training=True, row_tile=None, use_hw_prng=None):
    """Relative Gaussian noise: out = x * (1 + sigma * N(0,1)).

    `seed` controls the noise stream; vary it per training step, otherwise the
    same noise is reproduced on every call.
    """
    del is_relative_detach  # forward value identical; autodiff-only difference

    if (not training) or (sigma is None) or (sigma == 0):
        return x

    if use_hw_prng is None:
        use_hw_prng = jax.default_backend() == "tpu"

    orig_shape = x.shape
    n = x.size
    itemsize = jnp.dtype(x.dtype).itemsize

    # Lane-dense (rows, 128) view.  Pad only when there is a sub-128 tail.
    rows = -(-n // LANES)
    padded = rows * LANES != n
    flat = x.reshape(-1)
    if padded:
        flat = jnp.pad(flat, (0, rows * LANES - n))
    x2d = flat.reshape(rows, LANES)

    # Tile selection: ~4 MiB blocks, >=2 blocks for mid-size inputs (v7x
    # megacore), single full-array block for small inputs.
    if row_tile is None:
        row_tile = max(8, (4 << 20) // (LANES * itemsize))
    if rows > row_tile:
        tile_rows = row_tile
    elif rows * LANES * itemsize >= (1 << 20):
        tile_rows = _round_up(-(-rows // 2), 8)   # split so both TCs get work
    else:
        tile_rows = rows                           # block == full array: legal
    grid = (pl.cdiv(rows, tile_rows),)

    cost = pl.CostEstimate(
        flops=30 * n,                 # hash/convert + erfinv polynomial + fma
        transcendentals=2 * n,        # log + sqrt per element (normal draw)
        bytes_accessed=2 * n * itemsize,
    )
    cparams = pltpu.CompilerParams(
        dimension_semantics=("parallel",),
        vmem_limit_bytes=32 * 1024 * 1024,
    )

    if use_hw_prng:
        kernel = functools.partial(_gaussian_noise_hw_kernel, sigma=float(sigma))
        out2d = pl.pallas_call(
            kernel,
            out_shape=jax.ShapeDtypeStruct((rows, LANES), x.dtype),
            grid_spec=pltpu.PrefetchScalarGridSpec(
                num_scalar_prefetch=1,   # seed lands in SMEM
                grid=grid,
                in_specs=[pl.BlockSpec((tile_rows, LANES),
                                       lambda i, seed_ref: (i, 0))],
                out_specs=pl.BlockSpec((tile_rows, LANES),
                                       lambda i, seed_ref: (i, 0)),
            ),
            compiler_params=cparams,
            cost_estimate=cost,
        )(jnp.asarray([seed], dtype=jnp.int32), x2d)
    else:
        # Non-TPU backend (CPU interpret / tests): draw noise with jax.random
        # outside the kernel and stream it in as a second input.
        z2d = jax.random.normal(jax.random.PRNGKey(int(seed)),
                                (rows, LANES), jnp.float32)
        kernel = functools.partial(_gaussian_noise_precomputed_kernel,
                                   sigma=float(sigma))
        out2d = pl.pallas_call(
            kernel,
            out_shape=jax.ShapeDtypeStruct((rows, LANES), x.dtype),
            grid=grid,
            in_specs=[pl.BlockSpec((tile_rows, LANES), lambda i: (i, 0)),
                      pl.BlockSpec((tile_rows, LANES), lambda i: (i, 0))],
            out_specs=pl.BlockSpec((tile_rows, LANES), lambda i: (i, 0)),
            compiler_params=cparams,
            cost_estimate=cost,
        )(x2d, z2d)

    if padded:
        return out2d.reshape(-1)[:n].reshape(orig_shape)
    return out2d.reshape(orig_shape)


if __name__ == "__main__":
    key = jax.random.PRNGKey(0)
    B, C, H, W = 2, 4, 16, 16
    x = jax.random.normal(key, (B, C, H, W), jnp.float32)
    sigma = 0.1

    # Training path: relative Gaussian noise injected.
    out = gaussian_noise_pallas(x, seed=1234, sigma=sigma, training=True)
    jax.block_until_ready(out)
    assert out.shape == x.shape and out.dtype == x.dtype
    assert bool(jnp.all(jnp.isfinite(out)))
    assert not bool(jnp.array_equal(out, x))

    # Recover z = (out/x - 1) / sigma where |x| is not tiny, check ~N(0,1).
    xr = x.reshape(-1)
    outr = out.reshape(-1)
    mask = jnp.abs(xr) > 1e-3
    cnt = jnp.sum(mask)
    z = jnp.where(mask, (outr - xr) / (sigma * jnp.where(mask, xr, 1.0)), 0.0)
    z_mean = float(jnp.sum(z) / cnt)
    z_var = float(jnp.sum(jnp.where(mask, (z - z_mean) ** 2, 0.0)) / cnt)
    z_std = z_var ** 0.5
    assert abs(z_mean) < 0.15, f"noise mean off: {z_mean}"
    assert 0.8 < z_std < 1.2, f"noise std off: {z_std}"

    # Multi-tile path (grid > 1): distinct per-tile noise, still ~N(0,1).
    out_mt = gaussian_noise_pallas(x, seed=1234, sigma=sigma, training=True,
                                   row_tile=8)
    jax.block_until_ready(out_mt)
    z_mt = jnp.where(mask, (out_mt.reshape(-1) - xr)
                     / (sigma * jnp.where(mask, xr, 1.0)), 0.0)
    mt_mean = float(jnp.sum(z_mt) / cnt)
    mt_var = float(jnp.sum(jnp.where(mask, (z_mt - mt_mean) ** 2, 0.0)) / cnt)
    assert 0.8 < mt_var ** 0.5 < 1.2

    # Eval mode / sigma == 0 -> identity.
    assert bool(jnp.array_equal(
        gaussian_noise_pallas(x, seed=0, sigma=sigma, training=False), x))
    assert bool(jnp.array_equal(
        gaussian_noise_pallas(x, seed=0, sigma=0.0, training=True), x))

    # Non-lane-aligned shape exercises the (only-when-needed) pad/unpad path.
    x_odd = jax.random.normal(jax.random.PRNGKey(1), (3, 5, 7), jnp.float32)
    out_odd = gaussian_noise_pallas(x_odd, seed=7, sigma=sigma, training=True)
    jax.block_until_ready(out_odd)
    assert out_odd.shape == x_odd.shape
    assert bool(jnp.all(jnp.isfinite(out_odd)))
    assert not bool(jnp.array_equal(out_odd, x_odd))

    print("KERNEL_OK")
</pallas_src>

<mosaic_0001>
module attributes {stable_mosaic.version = 11 : i64} {
  func.func @_gaussian_noise_precomputed_kernel(%arg0: i32, %arg1: memref<16x128xf32, #tpu.memory_space<vmem>>, %arg2: memref<16x128xf32, #tpu.memory_space<vmem>>, %arg3: memref<16x128xf32, #tpu.memory_space<vmem>>) attributes {dimension_semantics = [#tpu.dimension_semantics<parallel>], iteration_bounds = array<i64: 1>, scalar_prefetch = 0 : i64, scratch_operands = 0 : i64, tpu.core_type = #tpu.core_type<tc>, window_params = [{transform_indices = @transform_0, window_bounds = array<i64: 16, 128>}, {transform_indices = @transform_1, window_bounds = array<i64: 16, 128>}, {transform_indices = @transform_2, window_bounds = array<i64: 16, 128>}]} {
    %c0 = arith.constant 0 : index
    %c0_0 = arith.constant 0 : index
    %0 = vector.load %arg2[%c0, %c0_0] : memref<16x128xf32, #tpu.memory_space<vmem>>, vector<16x128xf32>
    %cst = arith.constant 1.000000e-01 : f32
    %1 = vector.broadcast %cst : f32 to vector<16x128xf32>
    %2 = arith.mulf %1, %0 : vector<16x128xf32>
    %cst_1 = arith.constant 1.000000e+00 : f32
    %3 = vector.broadcast %cst_1 : f32 to vector<16x128xf32>
    %4 = arith.addf %3, %2 : vector<16x128xf32>
    %c0_2 = arith.constant 0 : index
    %c0_3 = arith.constant 0 : index
    %5 = vector.load %arg1[%c0_2, %c0_3] : memref<16x128xf32, #tpu.memory_space<vmem>>, vector<16x128xf32>
    %6 = arith.mulf %5, %4 : vector<16x128xf32>
    %c0_4 = arith.constant 0 : index
    %c0_5 = arith.constant 0 : index
    %7 = vector.load %arg3[%c0_4, %c0_5] : memref<16x128xf32, #tpu.memory_space<vmem>>, vector<16x128xf32>
    tpu.vector_store %arg3[%c0_4, %c0_5], %6 {strides = array<i32>} : memref<16x128xf32, #tpu.memory_space<vmem>>, vector<16x128xf32>,
    return
  }
  func.func @transform_0(%arg0: i32) -> (i32, i32) {
    %c0_i32 = arith.constant 0 : i32
    %c0_i32_0 = arith.constant 0 : i32
    return %arg0, %c0_i32 : i32, i32
  }
  func.func @transform_1(%arg0: i32) -> (i32, i32) {
    %c0_i32 = arith.constant 0 : i32
    %c0_i32_0 = arith.constant 0 : i32
    return %arg0, %c0_i32 : i32, i32
  }
  func.func @transform_2(%arg0: i32) -> (i32, i32) {
    %c0_i32 = arith.constant 0 : i32
    %c0_i32_0 = arith.constant 0 : i32
    return %arg0, %c0_i32 : i32, i32
  }
}

</mosaic_0001>

<bundles_post_ra>
// kernel: tpu_custom_call.1
= control target key start
LH: loop header
LB: loop body
LE: loop exit
PB: predicated region body
PF: predicated region fallthrough
CT: control target
= control target key end

     0   :  { %7 = vsyncpa [#allocation3], 0  ;;  %s212_s0 = inlined_call_operand.hbm [shape: f32[16,128], index: 0, kind: input, shape index: {}]   ;;  %s213_s1 = inlined_call_operand.hbm [shape: f32[16,128], index: 1, kind: input, shape index: {}]   ;;  %s214_s2 = inlined_call_operand.hbm [shape: f32[16,128], index: 2, kind: output, shape index: {}]  }
   0x1   :  { %8 = vsyncpa [#allocation6], 0 }
   0x2   :  { %9 = vsyncpa [#allocation4], 0  ;;  %s147_s9 = smov [#allocation2]   ;;  %s75_s13 = scalar_lea.hbm %s212_s0, 256 }
   0x3   :  { %s15_s10 = sshll.u32 %s147_s9, 4  ;;  %p76_p0 = scmp.ne.s32.totalorder %s212_s0, %s75_s13  ;;  %s16_s10 = int_to_ptr.vmem [resolvable:$true] %s15_s10 }
   0x4   :  { %p79_p1 = scmp.lt.u32.totalorder %s75_s13, %s212_s0 }
   0x6   :  { %p81_p2 = pnand %p79_p1, %p76_p0 }
   0x8   :  { %84 = shalt.err (!%p81_p2)
}
   0x9   :  { %s85_s18 = scalar_lea.vmem %s16_s10, 256  ;;  %p90_p4 = scmp.lt.s32.totalorder %s16_s10, %s16_s10 }
   0xa   :  { %p86_p3 = scmp.ne.s32.totalorder %s16_s10, %s85_s18  ;;  %p91_p5 = scmp.lt.s32.totalorder %s85_s18, %s85_s18 }
   0xc   :  { %p92_p6 = por %p91_p5, %p90_p4 }
   0xe   :  { %p93_p7 = pnand %p92_p6, %p86_p3 }
  0x10   :  { %96 = shalt.err (!%p93_p7)
}
  0x11   :  { %s148_s19 = smov 128   ;;  %s149_s20 = smov 8  }
  0x12   :  { %21 = dma.hbm_to_vmem [thread:$0]  %s212_s0, 256, %s16_s10, [#allocation3], %s148_s19, %s148_s19, %s149_s20  }
  0x13   :  { %s150_s23 = smov [#allocation5]   ;;  %s97_s27 = scalar_lea.hbm %s213_s1, 256 }
  0x14   :  { %s27_s24 = sshll.u32 %s150_s23, 4  ;;  %p98_p8 = scmp.ne.s32.totalorder %s213_s1, %s97_s27  ;;  %s28_s24 = int_to_ptr.vmem [resolvable:$true] %s27_s24 }
  0x15   :  { %p101_p9 = scmp.lt.u32.totalorder %s97_s27, %s213_s1 }
  0x17   :  { %p103_p10 = pnand %p101_p9, %p98_p8 }
  0x19   :  { %106 = shalt.err (!%p103_p10)
}
  0x1a   :  { %s107_s4 = scalar_lea.vmem %s28_s24, 256  ;;  %p112_p12 = scmp.lt.s32.totalorder %s28_s24, %s28_s24 }
  0x1b   :  { %p108_p11 = scmp.ne.s32.totalorder %s28_s24, %s107_s4  ;;  %p113_p13 = scmp.lt.s32.totalorder %s107_s4, %s107_s4 }
  0x1d   :  { %p114_p0 = por %p113_p13, %p112_p12 }
  0x1f   :  { %p115_p1 = pnand %p114_p0, %p108_p11 }
  0x21   :  { %118 = shalt.err (!%p115_p1)
}
  0x22   :  { %33 = dma.hbm_to_vmem [thread:$0]  %s213_s1, 256, %s28_s24, [#allocation6], %s148_s19, %s148_s19, %s149_s20  }
  0x23   :  { %141 = dma.done.wait [#allocation3], 256  }
  0x24   :  { %142 = vsyncadd [#allocation3], 4294967040 }
  0x25   :  { %143 = dma.done.wait [#allocation6], 256  }
  0x26   :  { %144 = vsyncadd [#allocation6], 4294967040  ;;  %v40_v0 = vld [vmem:[#allocation5] sm:$0xff]  ;;  %v41_v1 = vld [vmem:[#allocation5 + $0x8] sm:$0xff]  ;;  %s151_s6 = smov [#allocation7]  }
  0x27   :  { %v42_v2 = vmul.f32 0.1, %v40_v0  ;;  %v43_v3 = vmul.f32 0.1, %v41_v1  ;;  %v46_v4 = vld [vmem:[#allocation2] sm:$0xff]  ;;  %v47_v5 = vld [vmem:[#allocation2 + $0x8] sm:$0xff] }
  0x28   :  { %s57_s7 = sshll.u32 %s151_s6, 4  ;;  %s58_s7 = int_to_ptr.vmem [resolvable:$true] %s57_s7 }
  0x29   :  { %v44_v6 = vadd.f32 1.0, %v42_v2  ;;  %v45_v7 = vadd.f32 1.0, %v43_v3  ;;  %s119_s1 = scalar_lea.vmem %s58_s7, 256  ;;  %p124_p3 = scmp.lt.s32.totalorder %s58_s7, %s58_s7 }
  0x2a   :  { %p120_p2 = scmp.ne.s32.totalorder %s58_s7, %s119_s1  ;;  %p125_p4 = scmp.lt.s32.totalorder %s119_s1, %s119_s1 }
  0x2b   :  { %v48_v8 = vmul.f32 %v46_v4, %v44_v6  ;;  %v49_v9 = vmul.f32 %v47_v5, %v45_v7 }
  0x2c   :  { %p126_p5 = por %p125_p4, %p124_p3 }
  0x2d   :  { %50 = vst [vmem:[#allocation7] sm:$0xff] %v48_v8  ;;  %51 = vst [vmem:[#allocation7 + $0x8] sm:$0xff] %v49_v9 }
  0x2e   :  { %p127_p6 = pnand %p126_p5, %p120_p2 }
  0x30   :  { %130 = shalt.err (!%p127_p6)
}
  0x31   :  { %s131_s10 = scalar_lea.hbm %s214_s2, 256 }
  0x32   :  { %p132_p7 = scmp.ne.s32.totalorder %s214_s2, %s131_s10  ;;  %p135_p8 = scmp.lt.u32.totalorder %s131_s10, %s214_s2 }
  0x34   :  { %p137_p9 = pnand %p135_p8, %p132_p7 }
  0x36   :  { %140 = shalt.err (!%p137_p9)
}
  0x37   :  { %63 = dma.vmem_to_hbm [thread:$0]  %s58_s7, 256, %s214_s2, [#allocation4], %s148_s19, %s148_s19, %s149_s20  }
  0x38   :  { %145 = dma.done.wait [#allocation4], 256  }
  0x39   :  { %146 = vsyncadd [#allocation4], 4294967040 }
  0x3a   :  { %67 = vsyncpa [#allocation3], 1 }
  0x3b   :  { %68 = vsyncpa [#allocation6], 1 }
  0x3c   :  { %69 = vsyncpa [#allocation4], 1 }

</bundles_post_ra>
